<compile_context>
chip_gen: v7x
topology: tpu7x:2x2x1
jax: 0.10.0
libtpu: 0.0.40
codegen_flags: <defaults>
</compile_context>

<pallas_src>
import functools

import jax
import jax.numpy as jnp
from jax.experimental import pallas as pl
from jax.experimental.pallas import tpu as pltpu

EPS = 1e-5
IN_FEATURES = 128
HIDDEN = 64
NUM_CLASSES = 10
PAD_CLASSES = 16            # smallest padded logit width covering 10 classes
NEG_PAD = -1e30             # padded logits ~ -inf under log_softmax
# Fuse stats + forward into one pallas_call while the whole (padded) batch's
# hidden activations (f32, lane-padded 64 -> 128 lanes) fit comfortably in VMEM.
_FUSE_H_BYTES_LIMIT = 16 * 1024 * 1024


# ---------------------------------------------------------------------------
# Fused single-call path
# ---------------------------------------------------------------------------
def _fused_kernel(x_ref, w1_ref, gamma_ref, beta_ref, w2_ref, b2_ref, o_ref,
                  h_sc, sum_sc, sumsq_sc, scale_sc, shift_sc,
                  *, total_rows, tb, fc2_dtype):
    phase = pl.program_id(0)
    i = pl.program_id(1)

    @pl.when(jnp.logical_and(phase == 0, i == 0))
    def _init():
        sum_sc[...] = jnp.zeros_like(sum_sc)
        sumsq_sc[...] = jnp.zeros_like(sumsq_sc)

    @pl.when(phase == 0)
    def _stats():
        # fc1 (bias-free: b1 cancels exactly under training-mode BatchNorm).
        h = jnp.dot(x_ref[...], w1_ref[...], preferred_element_type=jnp.float32)
        h_sc[i] = h                                        # stash for phase 1
        # Mask ragged rows of the final tile out of the batch statistics.
        row = jax.lax.broadcasted_iota(jnp.int32, (tb, 1), 0) + i * tb
        hm = jnp.where(row < total_rows, h, 0.0)
        sum_sc[...] += jnp.sum(hm, axis=0, keepdims=True)
        sumsq_sc[...] += jnp.sum(hm * hm, axis=0, keepdims=True)

    @pl.when(jnp.logical_and(phase == 1, i == 0))
    def _fold():
        inv_n = 1.0 / total_rows
        mean = sum_sc[...] * inv_n
        var = jnp.maximum(sumsq_sc[...] * inv_n - mean * mean, 0.0)
        scale = gamma_ref[...] * jax.lax.rsqrt(var + EPS)
        scale_sc[...] = scale
        shift_sc[...] = beta_ref[...] - mean * scale

    @pl.when(phase == 1)
    def _forward():
        h = h_sc[i]                                        # VMEM-resident, no HBM re-read
        hr = jnp.maximum(h * scale_sc[...] + shift_sc[...], 0.0)
        logits = jnp.dot(hr.astype(fc2_dtype), w2_ref[...],
                         preferred_element_type=jnp.float32) + b2_ref[...]
        m = jnp.max(logits, axis=1, keepdims=True)
        z = logits - m
        o_ref[...] = z - jnp.log(jnp.sum(jnp.exp(z), axis=1, keepdims=True))


def _forward_fused(x_mat, w1_mat, gamma2, beta2, w2p, b2p, *, B, tb, nt, fc2_dtype):
    def x_map(p, i):
        # phase 0: stream tiles 0..nt-1; phase 1: pin at the last tile -> zero re-DMA.
        return (i * (1 - p) + (nt - 1) * p, 0)

    def o_map(p, i):
        # phase 0 never writes; pin its (unwritten) block at 0 so no garbage
        # writeback precedes phase 1's real writes; phase 1 streams tiles.
        return (i * p, 0)

    const = lambda p, i: (0, 0)  # noqa: E731  (VMEM-resident params)

    bytes_x = x_mat.size * x_mat.dtype.itemsize
    return pl.pallas_call(
        functools.partial(_fused_kernel, total_rows=B, tb=tb, fc2_dtype=fc2_dtype),
        out_shape=jax.ShapeDtypeStruct((B, PAD_CLASSES), jnp.float32),
        grid_spec=pltpu.PrefetchScalarGridSpec(
            num_scalar_prefetch=0,
            grid=(2, nt),
            in_specs=[
                pl.BlockSpec((tb, IN_FEATURES), x_map),
                pl.BlockSpec((IN_FEATURES, HIDDEN), const),   # resident
                pl.BlockSpec((1, HIDDEN), const),             # gamma
                pl.BlockSpec((1, HIDDEN), const),             # beta
                pl.BlockSpec((HIDDEN, PAD_CLASSES), const),   # w2 (padded, bf16)
                pl.BlockSpec((1, PAD_CLASSES), const),        # b2 (padded)
            ],
            out_specs=pl.BlockSpec((tb, PAD_CLASSES), o_map),
            scratch_shapes=[
                pltpu.VMEM((nt, tb, HIDDEN), jnp.float32),    # h for the whole batch
                pltpu.VMEM((1, HIDDEN), jnp.float32),         # sum(h)
                pltpu.VMEM((1, HIDDEN), jnp.float32),         # sum(h*h)
                pltpu.VMEM((1, HIDDEN), jnp.float32),         # folded scale
                pltpu.VMEM((1, HIDDEN), jnp.float32),         # folded shift
            ],
        ),
        compiler_params=pltpu.CompilerParams(
            dimension_semantics=("arbitrary", "arbitrary")),
        cost_estimate=pl.CostEstimate(
            flops=2 * B * IN_FEATURES * HIDDEN
            + 2 * B * HIDDEN * PAD_CLASSES + 8 * B * HIDDEN,
            transcendentals=B * PAD_CLASSES + B + HIDDEN,
            bytes_accessed=bytes_x + B * PAD_CLASSES * 4
            + w1_mat.size * w1_mat.dtype.itemsize + w2p.size * w2p.dtype.itemsize
            + 4 * HIDDEN * 4 + PAD_CLASSES * 4,
        ),
    )(x_mat, w1_mat, gamma2, beta2, w2p, b2p)


# ---------------------------------------------------------------------------
# Two-pass streamed fallback (very large batches: h does not fit VMEM)
# ---------------------------------------------------------------------------
def _bn_stats_kernel(x_ref, w1_ref, sum_ref, sumsq_ref, *, total_rows):
    i = pl.program_id(0)

    @pl.when(i == 0)
    def _():
        sum_ref[...] = jnp.zeros_like(sum_ref)
        sumsq_ref[...] = jnp.zeros_like(sumsq_ref)

    tb = x_ref.shape[0]
    h = jnp.dot(x_ref[...], w1_ref[...], preferred_element_type=jnp.float32)
    row = jax.lax.broadcasted_iota(jnp.int32, (tb, 1), 0) + i * tb
    hm = jnp.where(row < total_rows, h, 0.0)
    sum_ref[...] += jnp.sum(hm, axis=0, keepdims=True)
    sumsq_ref[...] += jnp.sum(hm * hm, axis=0, keepdims=True)


def _fwd_kernel(x_ref, w1_ref, scale_ref, shift_ref, w2_ref, b2_ref, o_ref, *, fc2_dtype):
    h = jnp.dot(x_ref[...], w1_ref[...], preferred_element_type=jnp.float32)
    hr = jnp.maximum(h * scale_ref[...] + shift_ref[...], 0.0)
    logits = jnp.dot(hr.astype(fc2_dtype), w2_ref[...],
                     preferred_element_type=jnp.float32) + b2_ref[...]
    m = jnp.max(logits, axis=1, keepdims=True)
    z = logits - m
    o_ref[...] = z - jnp.log(jnp.sum(jnp.exp(z), axis=1, keepdims=True))


def _forward_two_pass(x_mat, w1_mat, gamma2, beta2, w2p, b2p, *, B, tb, nt, fc2_dtype):
    bytes_x = x_mat.size * x_mat.dtype.itemsize
    bytes_w1 = w1_mat.size * w1_mat.dtype.itemsize

    h_sum, h_sumsq = pl.pallas_call(
        functools.partial(_bn_stats_kernel, total_rows=B),
        out_shape=(jax.ShapeDtypeStruct((1, HIDDEN), jnp.float32),
                   jax.ShapeDtypeStruct((1, HIDDEN), jnp.float32)),
        grid_spec=pltpu.PrefetchScalarGridSpec(
            num_scalar_prefetch=0,
            grid=(nt,),
            in_specs=[
                pl.BlockSpec((tb, IN_FEATURES), lambda i: (i, 0)),
                pl.BlockSpec((IN_FEATURES, HIDDEN), lambda i: (0, 0)),
            ],
            out_specs=(
                pl.BlockSpec((1, HIDDEN), lambda i: (0, 0)),
                pl.BlockSpec((1, HIDDEN), lambda i: (0, 0)),
            ),
        ),
        compiler_params=pltpu.CompilerParams(dimension_semantics=("arbitrary",)),
        cost_estimate=pl.CostEstimate(
            flops=2 * B * IN_FEATURES * HIDDEN + 3 * B * HIDDEN,
            transcendentals=0,
            bytes_accessed=bytes_x + bytes_w1 + 2 * HIDDEN * 4),
    )(x_mat, w1_mat)

    mean = h_sum / B
    var = jnp.maximum(h_sumsq / B - mean * mean, 0.0)
    scale = gamma2 * jax.lax.rsqrt(var + EPS)
    shift = beta2 - mean * scale

    return pl.pallas_call(
        functools.partial(_fwd_kernel, fc2_dtype=fc2_dtype),
        out_shape=jax.ShapeDtypeStruct((B, PAD_CLASSES), jnp.float32),
        grid_spec=pltpu.PrefetchScalarGridSpec(
            num_scalar_prefetch=0,
            grid=(nt,),
            in_specs=[
                pl.BlockSpec((tb, IN_FEATURES), lambda i: (i, 0)),
                pl.BlockSpec((IN_FEATURES, HIDDEN), lambda i: (0, 0)),
                pl.BlockSpec((1, HIDDEN), lambda i: (0, 0)),
                pl.BlockSpec((1, HIDDEN), lambda i: (0, 0)),
                pl.BlockSpec((HIDDEN, PAD_CLASSES), lambda i: (0, 0)),
                pl.BlockSpec((1, PAD_CLASSES), lambda i: (0, 0)),
            ],
            out_specs=pl.BlockSpec((tb, PAD_CLASSES), lambda i: (i, 0)),
        ),
        compiler_params=pltpu.CompilerParams(dimension_semantics=("parallel",)),
        cost_estimate=pl.CostEstimate(
            flops=2 * B * IN_FEATURES * HIDDEN
            + 2 * B * HIDDEN * PAD_CLASSES + 6 * B * HIDDEN,
            transcendentals=B * PAD_CLASSES + B,
            bytes_accessed=bytes_x + B * PAD_CLASSES * 4 + bytes_w1
            + w2p.size * w2p.dtype.itemsize + 3 * PAD_CLASSES * 4),
    )(x_mat, w1_mat, scale, shift, w2p, b2p)


# ---------------------------------------------------------------------------
# Wrapper
# ---------------------------------------------------------------------------
def classification_net(x, params, *, tile_rows=2048, matmul_dtype=jnp.bfloat16,
                       fc2_dtype=jnp.bfloat16, fuse=None):
    """x: (B, ...) with prod(...) == 128. Returns (B, 10) f32 log-probabilities.

    params = (w1, b1, gamma, beta, w2, b2):
      w1: (128, 64)   (transpose of PyTorch nn.Linear's (out, in) storage)
      b1: (64,)       (accepted but unused: exactly cancelled by training-mode BN)
      gamma, beta: (64,);  w2: (64, 10);  b2: (10,)
    """
    w1, b1, gamma, beta, w2, b2 = params
    del b1  # (h + b1) - mean(h + b1) == h - mean(h)

    B = x.shape[0]
    x_mat = x.reshape(B, -1).astype(matmul_dtype)
    assert x_mat.shape[1] == IN_FEATURES
    w1_mat = w1.astype(matmul_dtype)

    tb = tile_rows if B > tile_rows else B
    assert tb == B or tb % 16 == 0, "tile_rows must be a multiple of 16 (bf16 sublanes)"
    nt = pl.cdiv(B, tb)

    gamma2 = gamma.reshape(1, HIDDEN).astype(jnp.float32)
    beta2 = beta.reshape(1, HIDDEN).astype(jnp.float32)
    # Lane-tight fc2 parameters (pad 10 -> 16 classes); bf16 weights, f32 bias.
    w2p = jnp.zeros((HIDDEN, PAD_CLASSES), fc2_dtype).at[:, :NUM_CLASSES].set(
        w2.astype(fc2_dtype))
    b2p = jnp.full((1, PAD_CLASSES), NEG_PAD, jnp.float32).at[0, :NUM_CLASSES].set(
        b2.astype(jnp.float32))

    if fuse is None:
        fuse = nt * tb * 128 * 4 <= _FUSE_H_BYTES_LIMIT   # lane-padded h footprint

    if fuse:
        out_padded = _forward_fused(x_mat, w1_mat, gamma2, beta2, w2p, b2p,
                                    B=B, tb=tb, nt=nt, fc2_dtype=fc2_dtype)
    else:
        out_padded = _forward_two_pass(x_mat, w1_mat, gamma2, beta2, w2p, b2p,
                                       B=B, tb=tb, nt=nt, fc2_dtype=fc2_dtype)
    return out_padded[:, :NUM_CLASSES]


def init_params(key):
    """Deterministic init matching PyTorch shapes (linear weights stored transposed)."""
    k1, k2, k3, k4 = jax.random.split(key, 4)
    lim1 = 1.0 / jnp.sqrt(float(IN_FEATURES))
    lim2 = 1.0 / jnp.sqrt(float(HIDDEN))
    w1 = jax.random.uniform(k1, (IN_FEATURES, HIDDEN), jnp.float32, -lim1, lim1)
    b1 = jax.random.uniform(k2, (HIDDEN,), jnp.float32, -lim1, lim1)
    gamma = jnp.ones((HIDDEN,), jnp.float32)
    beta = jnp.zeros((HIDDEN,), jnp.float32)
    w2 = jax.random.uniform(k3, (HIDDEN, NUM_CLASSES), jnp.float32, -lim2, lim2)
    b2 = jax.random.uniform(k4, (NUM_CLASSES,), jnp.float32, -lim2, lim2)
    return (w1, b1, gamma, beta, w2, b2)


def reference_net(x, params, matmul_dtype=jnp.float32, fc2_dtype=jnp.float32):
    """Pure-JAX reference (training-mode BatchNorm1d), configurable matmul dtypes."""
    w1, b1, gamma, beta, w2, b2 = params
    B = x.shape[0]
    x2 = x.reshape(B, -1)
    h = jnp.dot(x2.astype(matmul_dtype), w1.astype(matmul_dtype),
                preferred_element_type=jnp.float32) + b1
    mean = jnp.mean(h, axis=0, keepdims=True)
    var = jnp.mean((h - mean) ** 2, axis=0, keepdims=True)
    hn = (h - mean) * jax.lax.rsqrt(var + EPS) * gamma + beta
    hr = jnp.maximum(hn, 0.0)
    logits = jnp.dot(hr.astype(fc2_dtype), w2.astype(fc2_dtype),
                     preferred_element_type=jnp.float32) + b2
    return jax.nn.log_softmax(logits, axis=1)


if __name__ == "__main__":
    key = jax.random.PRNGKey(0)
    kx, kx2, kp = jax.random.split(key, 3)
    params = init_params(kp)

    # Small batch; trailing dims flatten to 128 (mirrors x.view(x.size(0), -1)).
    x_small = jax.random.normal(kx, (8, 8, 16), dtype=jnp.float32)
    out = jax.block_until_ready(classification_net(x_small, params))
    assert out.shape == (8, NUM_CLASSES)
    # Rows must be valid log-probabilities.
    assert bool(jnp.all(jnp.abs(jnp.sum(jnp.exp(out), axis=1) - 1.0) < 1e-4))
    # Match a dtype-identical reference tightly, and a pure-f32 reference loosely.
    ref_m = reference_net(x_small, params, jnp.bfloat16, jnp.bfloat16)
    assert bool(jnp.max(jnp.abs(out - ref_m)) < 5e-3), float(jnp.max(jnp.abs(out - ref_m)))
    ref_f = reference_net(x_small, params)
    assert bool(jnp.max(jnp.abs(out - ref_f)) < 3e-2), float(jnp.max(jnp.abs(out - ref_f)))

    # Larger ragged batch exercising the multi-tile fused grid (3 tiles, last partial).
    x_big = jax.random.normal(kx2, (300, 128), dtype=jnp.float32)
    out_big = jax.block_until_ready(classification_net(x_big, params, tile_rows=128))
    assert out_big.shape == (300, NUM_CLASSES)
    ref_big = reference_net(x_big, params, jnp.bfloat16, jnp.bfloat16)
    assert bool(jnp.max(jnp.abs(out_big - ref_big)) < 5e-3), \
        float(jnp.max(jnp.abs(out_big - ref_big)))

    # Same batch through the streamed two-pass fallback path (used for very large B).
    out_fb = jax.block_until_ready(
        classification_net(x_big, params, tile_rows=128, fuse=False))
    assert bool(jnp.max(jnp.abs(out_fb - ref_big)) < 5e-3), \
        float(jnp.max(jnp.abs(out_fb - ref_big)))

    print("KERNEL_OK")
</pallas_src>

<mosaic_0001>
module attributes {stable_mosaic.version = 11 : i64} {
  func.func @_fused_kernel(%arg0: i32, %arg1: i32, %arg2: memref<8x128xbf16, #tpu.memory_space<vmem>>, %arg3: memref<128x64xbf16, #tpu.memory_space<vmem>>, %arg4: memref<1x64xf32, #tpu.memory_space<vmem>>, %arg5: memref<1x64xf32, #tpu.memory_space<vmem>>, %arg6: memref<64x16xbf16, #tpu.memory_space<vmem>>, %arg7: memref<1x16xf32, #tpu.memory_space<vmem>>, %arg8: memref<8x16xf32, #tpu.memory_space<vmem>>, %arg9: memref<1x8x64xf32, #tpu.memory_space<vmem>>, %arg10: memref<1x64xf32, #tpu.memory_space<vmem>>, %arg11: memref<1x64xf32, #tpu.memory_space<vmem>>, %arg12: memref<1x64xf32, #tpu.memory_space<vmem>>, %arg13: memref<1x64xf32, #tpu.memory_space<vmem>>) attributes {dimension_semantics = [#tpu.dimension_semantics<arbitrary>, #tpu.dimension_semantics<arbitrary>], iteration_bounds = array<i64: 2, 1>, scalar_prefetch = 0 : i64, scratch_operands = 5 : i64, tpu.core_type = #tpu.core_type<tc>, window_params = [{transform_indices = @transform_0, window_bounds = array<i64: 8, 128>}, {pipeline_mode = #tpu.pipeline_mode<synchronous>, transform_indices = @transform_1, window_bounds = array<i64: 128, 64>}, {pipeline_mode = #tpu.pipeline_mode<synchronous>, transform_indices = @transform_2, window_bounds = array<i64: 1, 64>}, {pipeline_mode = #tpu.pipeline_mode<synchronous>, transform_indices = @transform_3, window_bounds = array<i64: 1, 64>}, {pipeline_mode = #tpu.pipeline_mode<synchronous>, transform_indices = @transform_4, window_bounds = array<i64: 64, 16>}, {pipeline_mode = #tpu.pipeline_mode<synchronous>, transform_indices = @transform_5, window_bounds = array<i64: 1, 16>}, {transform_indices = @transform_6, window_bounds = array<i64: 8, 16>}]} {
    %c0_i32 = arith.constant 0 : i32
    %0 = arith.cmpi eq, %arg0, %c0_i32 : i32
    %c0_i32_0 = arith.constant 0 : i32
    %1 = arith.cmpi eq, %arg1, %c0_i32_0 : i32
    %2 = arith.andi %0, %1 : i1
    %3 = arith.extui %2 : i1 to i32
    %c0_i32_1 = arith.constant 0 : i32
    %4 = arith.cmpi ne, %3, %c0_i32_1 : i32
    scf.if %4 {
      %cst = arith.constant 0.000000e+00 : f32
      %16 = vector.broadcast %cst : f32 to vector<1x64xf32>
      %c0 = arith.constant 0 : index
      %c0_8 = arith.constant 0 : index
      %17 = vector.load %arg10[%c0, %c0_8] : memref<1x64xf32, #tpu.memory_space<vmem>>, vector<1x64xf32>
      tpu.vector_store %arg10[%c0, %c0_8], %16 {strides = array<i32>} : memref<1x64xf32, #tpu.memory_space<vmem>>, vector<1x64xf32>,
      %cst_9 = arith.constant 0.000000e+00 : f32
      %18 = vector.broadcast %cst_9 : f32 to vector<1x64xf32>
      %c0_10 = arith.constant 0 : index
      %c0_11 = arith.constant 0 : index
      %19 = vector.load %arg11[%c0_10, %c0_11] : memref<1x64xf32, #tpu.memory_space<vmem>>, vector<1x64xf32>
      tpu.vector_store %arg11[%c0_10, %c0_11], %18 {strides = array<i32>} : memref<1x64xf32, #tpu.memory_space<vmem>>, vector<1x64xf32>,
    } else {
    }
    %c0_i32_2 = arith.constant 0 : i32
    %5 = arith.cmpi eq, %arg0, %c0_i32_2 : i32
    %6 = arith.extui %5 : i1 to i32
    %c0_i32_3 = arith.constant 0 : i32
    %7 = arith.cmpi ne, %6, %c0_i32_3 : i32
    scf.if %7 {
      %c0 = arith.constant 0 : index
      %c0_8 = arith.constant 0 : index
      %16 = vector.load %arg2[%c0, %c0_8] : memref<8x128xbf16, #tpu.memory_space<vmem>>, vector<8x128xbf16>
      %c0_9 = arith.constant 0 : index
      %c0_10 = arith.constant 0 : index
      %17 = vector.load %arg3[%c0_9, %c0_10] : memref<128x64xbf16, #tpu.memory_space<vmem>>, vector<128x64xbf16>
      %cst = arith.constant dense<0.000000e+00> : vector<8x64xf32>
      %18 = tpu.matmul %16, %17, %cst {dimension_numbers = #tpu.dot_dimension_numbers<[1], [0], [0], [1], [0, 0, 1, 1], [], []>} : vector<8x128xbf16>, vector<128x64xbf16>, vector<8x64xf32> -> vector<8x64xf32>
      %19 = arith.index_cast %arg1 : i32 to index
      %c0_11 = arith.constant 0 : index
      %c0_12 = arith.constant 0 : index
      %20 = vector.load %arg9[%19, %c0_11, %c0_12] : memref<1x8x64xf32, #tpu.memory_space<vmem>>, vector<1x8x64xf32>
      %21 = vector.shape_cast %20 : vector<1x8x64xf32> to vector<8x64xf32>
      %22 = vector.shape_cast %18 : vector<8x64xf32> to vector<1x8x64xf32>
      tpu.vector_store %arg9[%19, %c0_11, %c0_12], %22 {strides = array<i32>} : memref<1x8x64xf32, #tpu.memory_space<vmem>>, vector<1x8x64xf32>,
      %23 = tpu.iota {dimensions = array<i32: 0>} : vector<8x1xi32>
      %c8_i32 = arith.constant 8 : i32
      %24 = arith.muli %arg1, %c8_i32 : i32
      %25 = vector.broadcast %24 : i32 to vector<8x1xi32>
      %26 = arith.addi %23, %25 : vector<8x1xi32>
      %c8_i32_13 = arith.constant 8 : i32
      %27 = vector.broadcast %c8_i32_13 : i32 to vector<8x1xi32>
      %28 = arith.cmpi slt, %26, %27 : vector<8x1xi32>
      %cst_14 = arith.constant 0.000000e+00 : f32
      %29 = vector.shape_cast %28 : vector<8x1xi1> to vector<8x1xi1>
      %30 = vector.broadcast %29 : vector<8x1xi1> to vector<8x64xi1>
      %31 = vector.broadcast %cst_14 : f32 to vector<8x64xf32>
      %32 = arith.select %30, %18, %31 : vector<8x64xi1>, vector<8x64xf32>
      %c0_15 = arith.constant 0 : index
      %c0_16 = arith.constant 0 : index
      %33 = vector.load %arg10[%c0_15, %c0_16] : memref<1x64xf32, #tpu.memory_space<vmem>>, vector<1x64xf32>
      %cst_17 = arith.constant dense<0.000000e+00> : vector<64xf32>
      %34 = vector.multi_reduction <add>, %32, %cst_17 [0] : vector<8x64xf32> to vector<64xf32>
      %35 = vector.shape_cast %34 : vector<64xf32> to vector<1x64xf32>
      %36 = arith.addf %33, %35 : vector<1x64xf32>
      %c0_18 = arith.constant 0 : index
      %c0_19 = arith.constant 0 : index
      %37 = vector.load %arg10[%c0_18, %c0_19] : memref<1x64xf32, #tpu.memory_space<vmem>>, vector<1x64xf32>
      tpu.vector_store %arg10[%c0_18, %c0_19], %36 {strides = array<i32>} : memref<1x64xf32, #tpu.memory_space<vmem>>, vector<1x64xf32>,
      %c0_20 = arith.constant 0 : index
      %c0_21 = arith.constant 0 : index
      %38 = vector.load %arg11[%c0_20, %c0_21] : memref<1x64xf32, #tpu.memory_space<vmem>>, vector<1x64xf32>
      %39 = arith.mulf %32, %32 : vector<8x64xf32>
      %cst_22 = arith.constant dense<0.000000e+00> : vector<64xf32>
      %40 = vector.multi_reduction <add>, %39, %cst_22 [0] : vector<8x64xf32> to vector<64xf32>
      %41 = vector.shape_cast %40 : vector<64xf32> to vector<1x64xf32>
      %42 = arith.addf %38, %41 : vector<1x64xf32>
      %c0_23 = arith.constant 0 : index
      %c0_24 = arith.constant 0 : index
      %43 = vector.load %arg11[%c0_23, %c0_24] : memref<1x64xf32, #tpu.memory_space<vmem>>, vector<1x64xf32>
      tpu.vector_store %arg11[%c0_23, %c0_24], %42 {strides = array<i32>} : memref<1x64xf32, #tpu.memory_space<vmem>>, vector<1x64xf32>,
    } else {
    }
    %c1_i32 = arith.constant 1 : i32
    %8 = arith.cmpi eq, %arg0, %c1_i32 : i32
    %c0_i32_4 = arith.constant 0 : i32
    %9 = arith.cmpi eq, %arg1, %c0_i32_4 : i32
    %10 = arith.andi %8, %9 : i1
    %11 = arith.extui %10 : i1 to i32
    %c0_i32_5 = arith.constant 0 : i32
    %12 = arith.cmpi ne, %11, %c0_i32_5 : i32
    scf.if %12 {
      %c0 = arith.constant 0 : index
      %c0_8 = arith.constant 0 : index
      %16 = vector.load %arg10[%c0, %c0_8] : memref<1x64xf32, #tpu.memory_space<vmem>>, vector<1x64xf32>
      %cst = arith.constant 1.250000e-01 : f32
      %17 = vector.broadcast %cst : f32 to vector<1x64xf32>
      %18 = arith.mulf %16, %17 : vector<1x64xf32>
      %c0_9 = arith.constant 0 : index
      %c0_10 = arith.constant 0 : index
      %19 = vector.load %arg11[%c0_9, %c0_10] : memref<1x64xf32, #tpu.memory_space<vmem>>, vector<1x64xf32>
      %cst_11 = arith.constant 1.250000e-01 : f32
      %20 = vector.broadcast %cst_11 : f32 to vector<1x64xf32>
      %21 = arith.mulf %19, %20 : vector<1x64xf32>
      %22 = arith.mulf %18, %18 : vector<1x64xf32>
      %23 = arith.subf %21, %22 : vector<1x64xf32>
      %cst_12 = arith.constant 0.000000e+00 : f32
      %24 = vector.broadcast %cst_12 : f32 to vector<1x64xf32>
      %25 = arith.maximumf %23, %24 : vector<1x64xf32>
      %c0_13 = arith.constant 0 : index
      %c0_14 = arith.constant 0 : index
      %26 = vector.load %arg4[%c0_13, %c0_14] : memref<1x64xf32, #tpu.memory_space<vmem>>, vector<1x64xf32>
      %cst_15 = arith.constant 9.99999974E-6 : f32
      %27 = vector.broadcast %cst_15 : f32 to vector<1x64xf32>
      %28 = arith.addf %25, %27 : vector<1x64xf32>
      %29 = math.rsqrt %28 : vector<1x64xf32>
      %30 = arith.mulf %26, %29 : vector<1x64xf32>
      %c0_16 = arith.constant 0 : index
      %c0_17 = arith.constant 0 : index
      %31 = vector.load %arg12[%c0_16, %c0_17] : memref<1x64xf32, #tpu.memory_space<vmem>>, vector<1x64xf32>
      tpu.vector_store %arg12[%c0_16, %c0_17], %30 {strides = array<i32>} : memref<1x64xf32, #tpu.memory_space<vmem>>, vector<1x64xf32>,
      %c0_18 = arith.constant 0 : index
      %c0_19 = arith.constant 0 : index
      %32 = vector.load %arg5[%c0_18, %c0_19] : memref<1x64xf32, #tpu.memory_space<vmem>>, vector<1x64xf32>
      %33 = arith.mulf %18, %30 : vector<1x64xf32>
      %34 = arith.subf %32, %33 : vector<1x64xf32>
      %c0_20 = arith.constant 0 : index
      %c0_21 = arith.constant 0 : index
      %35 = vector.load %arg13[%c0_20, %c0_21] : memref<1x64xf32, #tpu.memory_space<vmem>>, vector<1x64xf32>
      tpu.vector_store %arg13[%c0_20, %c0_21], %34 {strides = array<i32>} : memref<1x64xf32, #tpu.memory_space<vmem>>, vector<1x64xf32>,
    } else {
    }
    %c1_i32_6 = arith.constant 1 : i32
    %13 = arith.cmpi eq, %arg0, %c1_i32_6 : i32
    %14 = arith.extui %13 : i1 to i32
    %c0_i32_7 = arith.constant 0 : i32
    %15 = arith.cmpi ne, %14, %c0_i32_7 : i32
    scf.if %15 {
      %16 = arith.index_cast %arg1 : i32 to index
      %c0 = arith.constant 0 : index
      %c0_8 = arith.constant 0 : index
      %17 = vector.load %arg9[%16, %c0, %c0_8] : memref<1x8x64xf32, #tpu.memory_space<vmem>>, vector<1x8x64xf32>
      %18 = vector.shape_cast %17 : vector<1x8x64xf32> to vector<8x64xf32>
      %c0_9 = arith.constant 0 : index
      %c0_10 = arith.constant 0 : index
      %19 = vector.load %arg12[%c0_9, %c0_10] : memref<1x64xf32, #tpu.memory_space<vmem>>, vector<1x64xf32>
      %20 = vector.broadcast %19 : vector<1x64xf32> to vector<8x64xf32>
      %21 = arith.mulf %18, %20 : vector<8x64xf32>
      %c0_11 = arith.constant 0 : index
      %c0_12 = arith.constant 0 : index
      %22 = vector.load %arg13[%c0_11, %c0_12] : memref<1x64xf32, #tpu.memory_space<vmem>>, vector<1x64xf32>
      %23 = vector.broadcast %22 : vector<1x64xf32> to vector<8x64xf32>
      %24 = arith.addf %21, %23 : vector<8x64xf32>
      %cst = arith.constant 0.000000e+00 : f32
      %25 = vector.broadcast %cst : f32 to vector<8x64xf32>
      %26 = arith.maximumf %24, %25 : vector<8x64xf32>
      %27 = arith.truncf %26 : vector<8x64xf32> to vector<8x64xbf16>
      %c0_13 = arith.constant 0 : index
      %c0_14 = arith.constant 0 : index
      %28 = vector.load %arg6[%c0_13, %c0_14] : memref<64x16xbf16, #tpu.memory_space<vmem>>, vector<64x16xbf16>
      %cst_15 = arith.constant dense<0.000000e+00> : vector<8x16xf32>
      %29 = tpu.matmul %27, %28, %cst_15 {dimension_numbers = #tpu.dot_dimension_numbers<[1], [0], [0], [1], [0, 0, 1, 1], [], []>} : vector<8x64xbf16>, vector<64x16xbf16>, vector<8x16xf32> -> vector<8x16xf32>
      %c0_16 = arith.constant 0 : index
      %c0_17 = arith.constant 0 : index
      %30 = vector.load %arg7[%c0_16, %c0_17] : memref<1x16xf32, #tpu.memory_space<vmem>>, vector<1x16xf32>
      %31 = vector.broadcast %30 : vector<1x16xf32> to vector<8x16xf32>
      %32 = arith.addf %29, %31 : vector<8x16xf32>
      %cst_18 = arith.constant dense<0xFF800000> : vector<8xf32>
      %33 = vector.multi_reduction <maximumf>, %32, %cst_18 [1] : vector<8x16xf32> to vector<8xf32>
      %34 = vector.shape_cast %33 : vector<8xf32> to vector<8x1xf32>
      %35 = vector.broadcast %34 : vector<8x1xf32> to vector<8x16xf32>
      %36 = arith.subf %32, %35 : vector<8x16xf32>
      %37 = math.exp %36 : vector<8x16xf32>
      %cst_19 = arith.constant dense<0.000000e+00> : vector<8xf32>
      %38 = vector.multi_reduction <add>, %37, %cst_19 [1] : vector<8x16xf32> to vector<8xf32>
      %39 = vector.shape_cast %38 : vector<8xf32> to vector<8x1xf32>
      %40 = math.log %39 : vector<8x1xf32>
      %41 = vector.broadcast %40 : vector<8x1xf32> to vector<8x16xf32>
      %42 = arith.subf %36, %41 : vector<8x16xf32>
      %c0_20 = arith.constant 0 : index
      %c0_21 = arith.constant 0 : index
      %43 = vector.load %arg8[%c0_20, %c0_21] : memref<8x16xf32, #tpu.memory_space<vmem>>, vector<8x16xf32>
      tpu.vector_store %arg8[%c0_20, %c0_21], %42 {strides = array<i32>} : memref<8x16xf32, #tpu.memory_space<vmem>>, vector<8x16xf32>,
    } else {
    }
    return
  }
  func.func @transform_0(%arg0: i32, %arg1: i32) -> (i32, i32) {
    %c1_i32 = arith.constant 1 : i32
    %0 = arith.subi %c1_i32, %arg0 : i32
    %1 = arith.muli %arg1, %0 : i32
    %c0_i32 = arith.constant 0 : i32
    %2 = arith.muli %c0_i32, %arg0 : i32
    %3 = arith.addi %1, %2 : i32
    %c0_i32_0 = arith.constant 0 : i32
    %c0_i32_1 = arith.constant 0 : i32
    return %3, %c0_i32_0 : i32, i32
  }
  func.func @transform_1(%arg0: i32, %arg1: i32) -> (i32, i32) {
    %c0_i32 = arith.constant 0 : i32
    %c0_i32_0 = arith.constant 0 : i32
    %c0_i32_1 = arith.constant 0 : i32
    return %c0_i32, %c0_i32_0 : i32, i32
  }
  func.func @transform_2(%arg0: i32, %arg1: i32) -> (i32, i32) {
    %c0_i32 = arith.constant 0 : i32
    %c0_i32_0 = arith.constant 0 : i32
    %c0_i32_1 = arith.constant 0 : i32
    return %c0_i32, %c0_i32_0 : i32, i32
  }
  func.func @transform_3(%arg0: i32, %arg1: i32) -> (i32, i32) {
    %c0_i32 = arith.constant 0 : i32
    %c0_i32_0 = arith.constant 0 : i32
    %c0_i32_1 = arith.constant 0 : i32
    return %c0_i32, %c0_i32_0 : i32, i32
  }
  func.func @transform_4(%arg0: i32, %arg1: i32) -> (i32, i32) {
    %c0_i32 = arith.constant 0 : i32
    %c0_i32_0 = arith.constant 0 : i32
    %c0_i32_1 = arith.constant 0 : i32
    return %c0_i32, %c0_i32_0 : i32, i32
  }
  func.func @transform_5(%arg0: i32, %arg1: i32) -> (i32, i32) {
    %c0_i32 = arith.constant 0 : i32
    %c0_i32_0 = arith.constant 0 : i32
    %c0_i32_1 = arith.constant 0 : i32
    return %c0_i32, %c0_i32_0 : i32, i32
  }
  func.func @transform_6(%arg0: i32, %arg1: i32) -> (i32, i32) {
    %0 = arith.muli %arg1, %arg0 : i32
    %c0_i32 = arith.constant 0 : i32
    %c0_i32_0 = arith.constant 0 : i32
    return %0, %c0_i32 : i32, i32
  }
}

</mosaic_0001>

<bundles_post_ra>
// kernel: tpu_custom_call.1
= control target key start
LH: loop header
LB: loop body
LE: loop exit
PB: predicated region body
PF: predicated region fallthrough
CT: control target
= control target key end

     0   :  { %11 = vsyncpa [#allocation8], 0  ;;  %s1002_s0 = inlined_call_operand.vmem [shape: bf16[8,128], index: 0, kind: input, shape index: {}]   ;;  %s1003_s1 = inlined_call_operand.vmem [shape: bf16[128,64], index: 1, kind: input, shape index: {}]   ;;  %s1004_s2 = inlined_call_operand.vmem [shape: f32[1,64], index: 2, kind: input, shape index: {}]   ;;  %s1005_s3 = inlined_call_operand.vmem [shape: f32[1,64], index: 3, kind: input, shape index: {}]   ;;  %s1006_s4 = inlined_call_operand.vmem [shape: bf16[64,16], index: 4, kind: input, shape index: {}]   ;;  %s1007_s5 = inlined_call_operand.vmem [shape: f32[1,16], index: 5, kind: input, shape index: {}]   ;;  %s1008_s6 = inlined_call_operand.hbm [shape: f32[8,16], index: 6, kind: output, shape index: {}]  }
   0x1   :  { %13 = vsyncpa [#allocation8 + $0x1], 0  ;;  %s889_s21 = smov 0   ;;  %s891_s22 = smov 0  }
   0x2   :  { %s893_s23 = smov 0  }
   0x3 LB: > { %s657_s24 = sadd.s32 4294967295, %s846_s23   ;;  %s658_s25 = sadd.s32 4294967294, %s846_s23   ;;  %s846_s23 = sphi %s893_s23, %s19_s23   ;;  %s842_s22 = sphi %s891_s22, %s1011_s22   ;;  %s838_s21 = sphi %s889_s21, %s1010_s21  }
   0x4   : > { %s31_s26 = sadd.s32 1, %s842_s22  ;;  %p662_p0 = scmp.ge.s32.totalorder %s846_s23, 1 }
   0x5   : > { %p33_p1 = scmp.ge.s32.totalorder %s31_s26, 2  ;;  %p236_p2 = scmp.lt.s32.totalorder %s846_s23, 3 }
   0x7   : > { %s1013_s26 = smov (%p33_p1, %s31_s26), 0  ;;  %p237_p3 = pnand %p662_p0, %p236_p2 }
   0x8   : > { %p277_p4 = scmp.eq.s32.totalorder (!%p237_p3), %s838_s21, 0 }
   0x9   : > { %240 = sbr.rel (%p237_p3) target bundleno = 892 (0x37c), region = 44 }
  0x10   : > { %282 = sbr.rel (!%p277_p4) target bundleno = 23 (0x17), region = 48  ;;  %vm283_vm0 = vcmask (%p277_p4), 516096   ;;  %v848_v0 = vmov (%p277_p4), 0.0  }
  0x11   : > { %284 = vst.msk [vmem:[#allocation3] sm:$0x1] (%p277_p4), %vm283_vm0, %v848_v0  ;;  %285 = vst.msk [vmem:[#allocation4] sm:$0x1] (%p277_p4), %vm283_vm0, %v848_v0 }
  0x17 PF: > { %p664_p5 = scmp.ne.s32.totalorder %s838_s21, 0 }
  0x18   : > { %v776_v1 = vld [vmem:[%s1003_s1] sm:$0xff] (!%p664_p5)   ;;  %v849_v2 = vmov (!%p664_p5), 0.0   ;;  %v777_v3 = vld [vmem:[%s1003_s1 + $0x8] sm:$0xff] (!%p664_p5)   ;;  %vm850_vm1 = vmmov (!%p664_p5), 0   ;;  %v778_v4 = vld [vmem:[%s1003_s1 + $0x10] sm:$0xff] (!%p664_p5)   ;;  %vm396_vm2 = vcmask (!%p664_p5), 523264  }
  0x19   : > { %288 = sbr.rel (%p664_p5) target bundleno = 287 (0x11f), region = 52  ;;  %703 = vmatprep.subr.bf16.mxu0 (!%p664_p5), %v849_v2  ;;  %719 = vmatprep.mubr.msk.bf16.mxu0 (!%p664_p5), %vm850_vm1, %v849_v2  ;;  %v779_v5 = vld [vmem:[%s1003_s1 + $0x18] sm:$0xff] (!%p664_p5)   ;;  %v780_v6 = vld [vmem:[%s1003_s1 + $0x20] sm:$0xff] (!%p664_p5)   ;;  %v781_v7 = vld [vmem:[%s1003_s1 + $0x28] sm:$0xff] (!%p664_p5)   ;;  %vm415_vm3 = vcmask (!%p664_p5), 516096  }
  0x1a   : > { %704 = vmatpush3.bf16.msra.mxu0 (!%p664_p5), %v776_v1  ;;  %v782_v8 = vld [vmem:[%s1003_s1 + $0x30] sm:$0xff] (!%p664_p5)   ;;  %v783_v9 = vld [vmem:[%s1003_s1 + $0x38] sm:$0xff] (!%p664_p5)   ;;  %v289_v10 = vld [vmem:[%s1002_s0] sm:$0xf] (!%p664_p5) }
  0x1b   : > { %705 = vmatprep.subr.bf16.mxu0 (!%p664_p5), %v849_v2  ;;  %v406_v27 = vld [vmem:[#allocation3] sm:$0x1] (!%p664_p5)  ;;  %v417_v30 = vld [vmem:[#allocation4] sm:$0x1] (!%p664_p5) }
  0x1e   : > { %706 = vmatpush3.bf16.msra.mxu0 (!%p664_p5), %v777_v3 }
  0x1f   : > { %707 = vmatprep.subr.bf16.mxu0 (!%p664_p5), %v849_v2 }
  0x22   : > { %708 = vmatpush3.bf16.msra.mxu0 %v778_v4 }
  0x23   : > { %709 = vmatprep.subr.bf16.mxu0 %v849_v2 }
  0x26   : > { %710 = vmatpush3.bf16.msra.mxu0 %v779_v5 }
  0x27   : > { %711 = vmatprep.subr.bf16.mxu0 %v849_v2 }
  0x2a   : > { %712 = vmatpush3.bf16.msra.mxu0 %v780_v6 }
  0x2b   : > { %713 = vmatprep.subr.bf16.mxu0 %v849_v2 }
  0x2e   : > { %714 = vmatpush3.bf16.msra.mxu0 %v781_v7 }
  0x2f   : > { %715 = vmatprep.subr.bf16.mxu0 %v849_v2 }
  0x32   : > { %716 = vmatpush3.bf16.msra.mxu0 %v782_v8 }
  0x33   : > { %717 = vmatprep.subr.bf16.mxu0 %v849_v2 }
  0x36   : > { %718 = vmatpush3.bf16.msra.mxu0 %v783_v9 }
  0x39   : > { %720 = vmatmul.mubr.bf16.vlgmr.msra.gmra.mrb[0].mxu0 %v289_v10 }
 0x10c   : > { %v388_v11 = vpop.f32.mrb[0].mxu0 }
 0x10d   : > { %397 = vst.msk [vmem:[#allocation2] sm:$0xff] %vm396_vm2, %v388_v11  ;;  %v407_v12 = vsel %vm396_vm2, %v388_v11, 0.0  ;;  %v418_v13 = vmul.f32 %v388_v11, %v388_v11  ;;  %v721_v14 = vpop.f32.mrb[1].mxu0 }
 0x10e   : > { %v408_v15 = vrot.slane %v407_v12, 4  ;;  %v391_v16 = vpop.f32.mrb[2].mxu0 }
 0x10f   : > { %v419_v17 = vsel %vm396_vm2, %v418_v13, 0.0  ;;  %v722_v18 = vpop.f32.mrb[3].mxu0 }
 0x110   : > { %v409_v19 = vadd.f32 %v408_v15, %v407_v12  ;;  %v420_v20 = vrot.slane %v419_v17, 4 }
 0x112   : > { %v410_v21 = vrot.slane %v409_v19, 2  ;;  %v421_v22 = vadd.f32 %v420_v20, %v419_v17 }
 0x114   : > { %v411_v23 = vadd.f32 %v410_v21, %v409_v19  ;;  %v422_v24 = vrot.slane %v421_v22, 2 }
 0x116   : > { %v412_v25 = vrot.slane %v411_v23, 1  ;;  %v423_v26 = vadd.f32 %v422_v24, %v421_v22 }
 0x118   : > { %v413_v28 = vadd.f32 %v412_v25, %v411_v23  ;;  %v424_v29 = vrot.slane %v423_v26, 1 }
 0x11a   : > { %v414_v31 = vadd.f32 %v413_v28, %v406_v27  ;;  %v425_v32 = vadd.f32 %v424_v29, %v423_v26 }
 0x11c   : > { %416 = vst.msk [vmem:[#allocation3] sm:$0x1] %vm415_vm3, %v414_v31  ;;  %v426_v33 = vadd.f32 %v425_v32, %v417_v30 }
 0x11e   : > { %427 = vst.msk [vmem:[#allocation4] sm:$0x1] %vm415_vm3, %v426_v33 }
 0x11f PF: > { %p428_p6 = scmp.eq.s32.totalorder %s838_s21, 1 }
 0x120   : > { %v440_v42 = vld [vmem:[%s1004_s2] sm:$0x1] (%p428_p6)  ;;  %vm444_vm4 = vcmask (%p428_p6), 516096  }
 0x121   : > { %432 = sbr.rel (!%p428_p6) target bundleno = 320 (0x140), region = 56  ;;  %v446_v45 = vld [vmem:[%s1005_s3] sm:$0x1] (%p428_p6) }
 0x123   : > { %v433_v34 = vld [vmem:[#allocation3] sm:$0x1] (%p428_p6) }
 0x124   : > { %v434_v36 = vmul.f32 (%p428_p6), 0.125, %v433_v34 }
 0x125   : > { %v435_v35 = vld [vmem:[#allocation4] sm:$0x1] (%p428_p6) }
 0x126   : > { %v436_v37 = vmul.f32 (%p428_p6), 0.125, %v435_v35  ;;  %v437_v38 = vmul.f32 (%p428_p6), %v434_v36, %v434_v36 }
 0x128   : > { %v438_v39 = vsub.f32 %v436_v37, %v437_v38 }
 0x12a   : > { %v439_v40 = vmax.f32 %v438_v39, 0.0 }
 0x12c   : > { %v441_v41 = vadd.f32 1e-05, %v439_v40 }
 0x12e   : > { %784 = vrsqrt.f32 %v441_v41 }
 0x138   : > { %v785_v43 = vpop.eup %784 }
 0x139   : > { %v443_v44 = vmul.f32 %v785_v43, %v440_v42 }
 0x13b   : > { %445 = vst.msk [vmem:[#allocation5] sm:$0x1] %vm444_vm4, %v443_v44  ;;  %v447_v46 = vmul.f32 %v443_v44, %v434_v36 }
 0x13d   : > { %v448_v47 = vsub.f32 %v446_v45, %v447_v46 }
 0x13f   : > { %449 = vst.msk [vmem:[#allocation6] sm:$0x1] %vm444_vm4, %v448_v47 }
 0x140 PF: > { %p674_p7 = scmp.ne.s32.totalorder %s838_s21, 1 }
 0x141   : > { %v786_v48 = vld [vmem:[%s1006_s4] sm:$0xff] (!%p674_p7)   ;;  %v851_v49 = vmov (!%p674_p7), 0.0   ;;  %v787_v50 = vld [vmem:[%s1006_s4 + $0x8] sm:$0xff] (!%p674_p7)   ;;  %vm852_vm5 = vmmov (!%p674_p7), 0   ;;  %v788_v55 = vld [vmem:[%s1006_s4 + $0x10] sm:$0xff] (!%p674_p7)   ;;  %vm513_vm6 = vcmask (!%p674_p7), 523264  }
 0x142   : > { %452 = sbr.rel (%p674_p7) target bundleno = 869 (0x365), region = 60  ;;  %723 = vmatprep.subr.bf16.mxu0 (!%p674_p7), %v851_v49  ;;  %731 = vmatprep.mubr.msk.bf16.mxu0 (!%p674_p7), %vm852_vm5, %v851_v49  ;;  %v455_v51 = vld [vmem:[#allocation2] sm:$0xff] (!%p674_p7)  ;;  %v675_v52 = vld [vmem:[#allocation5] ss:$0 sm:$0xff] (!%p674_p7)  ;;  %v789_v58 = vld [vmem:[%s1006_s4 + $0x18] sm:$0xff] (!%p674_p7)   ;;  %vm557_vm7 = vcmask (!%p674_p7), 130048  }
 0x143   : > { %724 = vmatpush3.bf16.msra.mxu0 (!%p674_p7), %v786_v48  ;;  %v463_v54 = vmul.f32 (!%p674_p7), %v675_v52, %v455_v51  ;;  %v677_v60 = vld [vmem:[%s1007_s5] ss:$0 sm:$0xff] (!%p674_p7) }
 0x144   : > { %725 = vmatprep.subr.bf16.mxu0 (!%p674_p7), %v851_v49 }
 0x146   : > { %v676_v53 = vld [vmem:[#allocation6] ss:$0 sm:$0xff] (!%p674_p7) }
 0x147   : > { %726 = vmatpush3.bf16.msra.mxu0 (!%p674_p7), %v787_v50  ;;  %v471_v56 = vadd.f32 (!%p674_p7), %v676_v53, %v463_v54 }
 0x148   : > { %727 = vmatprep.subr.bf16.mxu0 (!%p674_p7), %v851_v49 }
 0x149   : > { %v472_v57 = vmax.f32 %v471_v56, 0.0 }
 0x14b   : > { %728 = vmatpush3.bf16.msra.mxu0 %v788_v55  ;;  %v473_v59 = vpack.c.bf16 %v472_v57, %v472_v57 }
 0x14c   : > { %729 = vmatprep.subr.bf16.mxu0 %v851_v49 }
 0x14f   : > { %730 = vmatpush3.bf16.msra.mxu0 %v789_v58 }
 0x152   : > { %732 = vmatmul.mubr.msk.bf16.vlgmr.msra.gmra.mrb[0].mxu0 %vm513_vm6, %v473_v59 }
 0x225   : > { %v551_v61 = vpop.f32.mrb[0].mxu0 }
 0x226   : > { %v552_v62 = vadd.f32 %v677_v60, %v551_v61  ;;  %v733_v63 = vpop.f32.mrb[1].mxu0 }
 0x227   : > { %v554_v0 = vpop.f32.mrb[2].mxu0 }
 0x228   : > { %v734_v1 = vpop.f32.mrb[3].mxu0  ;;  %v558_v2 = vsel %vm557_vm7, %v552_v62, -inf }
 0x229   : > { %559 = vmax.xlane.f32.xlu0 %v558_v2 }
 0x2b6   : > { %v560_v3 = vpop.xlane.xlu0 %559 }
 0x2b7   : > { %v561_v4 = vsub.f32 %v552_v62, %v560_v3 }
 0x2b9   : > { %v562_v5 = vmul.f32 1.442695, %v561_v4 }
 0x2bb   : > { %790 = vpow2.f32 %v562_v5 }
 0x2c5   : > { %v791_v6 = vpop.eup %790 }
 0x2c6   : > { %v564_v7 = vsel %vm557_vm7, %v791_v6, 0.0 }
 0x2c7   : > { %565 = vadd.xlane.f32.xlu0 %v564_v7 }
 0x354   : > { %v566_v8 = vpop.xlane.xlu0 %565 }
 0x355   : > { %792 = vlog2.f32 %v566_v8 }
 0x35f   : > { %v793_v9 = vpop.eup %792 }
 0x360   : > { %v568_v10 = vmul.f32 0.6931472, %v793_v9 }
 0x362   : > { %v569_v11 = vsub.f32 %v561_v4, %v568_v10 }
 0x364   : > { %570 = vst.msk [vmem:[#allocation7] sm:$0xff] %vm557_vm7, %v569_v11 }
 0x365 PF: > { %p968_p8 = scmp.eq.s32.totalorder %s657_s24, 1  ;;  %s853_s17 = smov [#allocation7]  }
 0x366   : > { %s586_s18 = sshll.u32 %s853_s17, 4  ;;  %s587_s18 = int_to_ptr.vmem [resolvable:$true] %s586_s18 }
 0x367   : > { %s794_s19 = scalar_lea.vmem %s587_s18, 128  ;;  %s800_s20 = scalar_lea.vmem %s587_s18, 256 }
 0x368   : > { %p795_p9 = scmp.ne.s32.totalorder %s587_s18, %s794_s19  ;;  %p801_p12 = scmp.lt.s32.totalorder %s587_s18, %s587_s18 }
 0x369   : > { %p802_p13 = scmp.lt.s32.totalorder %s800_s20, %s794_s19 }
 0x36a   : > { %p796_p10 = pnand %p795_p9, %p968_p8 }
 0x36b   : > { %p803_p0 = por %p802_p13, %p801_p12 }
 0x36c   : > { %p797_p11 = pneg %p796_p10 }
 0x36e   : > { %p804_p1 = pnand %p803_p0, %p797_p11 }
 0x370   : > { %807 = shalt.err (!%p804_p1)
}
 0x371   : > { %s808_s28 = scalar_lea.hbm %s1008_s6, 128 }
 0x372   : > { %p809_p2 = scmp.ne.s32.totalorder %s1008_s6, %s808_s28  ;;  %p814_p5 = scmp.lt.u32.totalorder %s808_s28, %s1008_s6 }
 0x374   : > { %p810_p3 = pnand %p809_p2, %p968_p8 }
 0x376   : > { %p811_p4 = pneg %p810_p3 }
 0x378   : > { %p816_p6 = pnand %p814_p5, %p811_p4 }
 0x37a   : > { %819 = shalt.err (!%p816_p6)
}
 0x37b   : > { %736 = dma.vmem_to_hbm [thread:$0]  (%p968_p8), %s587_s18, 128, %s1008_s6, [#allocation8]  }
 0x37c PF: > { %p744_p7 = scmp.ge.s32.totalorder %s846_s23, 2  ;;  %p745_p9 = scmp.eq.s32.totalorder %s658_s25, 1 }
 0x37e   : > { %p740_p10 = pnand %p745_p9, %p744_p7 }
 0x380   : > { %833 = dma.done.wait (!%p740_p10), [#allocation8], 128  }
 0x381   : > { %835 = vsyncadd (!%p740_p10), [#allocation8], 4294967168  ;;  %s19_s23 = sadd.s32 1, %s846_s23   ;;  %s1010_s21 = smov %s842_s22 }
 0x382   : > { %p16_p11 = scmp.ge.s32.totalorder %s19_s23, 4   ;;  %s1011_s22 = smov %s1013_s26 }
 0x384   :  { %18 = sbr.rel (!%p16_p11) target bundleno = 3 (0x3), region = 97 }
 0x38b   :  { %604 = vsyncpa [#allocation8], 1 }
 0x38c   :  { %606 = vsyncpa [#allocation8 + $0x1], 1 }

</bundles_post_ra>
